<compile_context>
chip_gen: v5e
topology: v5e:2x2
jax: 0.10.0
libtpu: 0.0.40
codegen_flags: <defaults>
</compile_context>

<pallas_src>
import jax
import jax.numpy as jnp
from jax.experimental import pallas as pl
from jax.experimental.pallas import tpu as pltpu


def _modulated_matmul_kernel(x_ref, w_ref, gate_ref, comb_ref, out_ref, acc_ref):
    """out = (x @ W^T) * gate + (b * gate + hbias), tiled over (M, N, K).

    x_ref    : (TM, TK)   token tile
    w_ref    : (TK, TN)   pre-transposed weight tile (K, N layout)
    gate_ref : (TM, TN)   per-row gate
    comb_ref : (TM, TN)   per-row combined additive term (b*gate + hyper_bias)
    out_ref  : (TM, TN)
    acc_ref  : (TM, TN)   f32 accumulator scratch (resident across K steps)
    """
    @pl.when(pl.program_id(2) == 0)
    def _():
        acc_ref[...] = jnp.zeros_like(acc_ref)

    acc_ref[...] += jnp.dot(x_ref[...], w_ref[...],
                            preferred_element_type=jnp.float32)

    @pl.when(pl.program_id(2) == pl.num_programs(2) - 1)
    def _():
        out_ref[...] = (acc_ref[...] * gate_ref[...]
                        + comb_ref[...]).astype(out_ref.dtype)


def _round_up(x, m):
    return ((x + m - 1) // m) * m


def _pad2d(a, rows, cols):
    pr, pc = rows - a.shape[0], cols - a.shape[1]
    if pr == 0 and pc == 0:
        return a
    return jnp.pad(a, ((0, pr), (0, pc)))


def concat_scale_linear(context, x, params):
    """context: (B, 1+dim_c) f32, x: (B, S, dim_in) or (B, dim_in) f32."""
    w, b, wg, bg, wb = (params["w"], params["b"], params["wg"],
                        params["bg"], params["wb"])

    squeeze_seq = (x.ndim == 2)
    if squeeze_seq:
        x = x[:, None, :]
    B, S, Din = x.shape
    Dout = w.shape[0]
    M = B * S

    # ---- hyper-network (tiny M=B matmuls) hoisted out of the hot kernel ----
    gate = context @ wg.T + bg                       # (B, Dout)
    hbias = context @ wb.T                           # (B, Dout)
    # Fold the main-layer bias into the additive term.
    comb = b[None, :] * gate + hbias                 # (B, Dout)

    # Flatten tokens; broadcast per-batch modulation to per-row slabs.
    x2 = x.reshape(M, Din)
    gate_rows = jnp.broadcast_to(gate[:, None, :], (B, S, Dout)).reshape(M, Dout)
    comb_rows = jnp.broadcast_to(comb[:, None, :], (B, S, Dout)).reshape(M, Dout)

    # Pre-transpose the weight once (K, N layout for the MXU).
    wT = w.T                                         # (Din, Dout)

    # ---- tiling: lane-dense N, 128-aligned K, 8-aligned M ----
    Np = _round_up(Dout, 128)
    TN = 512 if Np % 512 == 0 else (256 if Np % 256 == 0 else 128)
    Kp = _round_up(Din, 128)
    TK = 512 if Kp % 512 == 0 else (256 if Kp % 256 == 0 else 128)
    TM = 256 if M >= 256 else _round_up(M, 8)
    Mp = _round_up(M, TM)

    x_p = _pad2d(x2, Mp, Kp)
    w_p = _pad2d(wT, Kp, Np)
    gate_p = _pad2d(gate_rows, Mp, Np)
    comb_p = _pad2d(comb_rows, Mp, Np)

    grid = (Mp // TM, Np // TN, Kp // TK)

    out_p = pl.pallas_call(
        _modulated_matmul_kernel,
        out_shape=jax.ShapeDtypeStruct((Mp, Np), x.dtype),
        grid_spec=pltpu.PrefetchScalarGridSpec(
            num_scalar_prefetch=0,
            grid=grid,
            in_specs=[
                pl.BlockSpec((TM, TK), lambda i, j, k: (i, k)),   # x tile
                pl.BlockSpec((TK, TN), lambda i, j, k: (k, j)),   # W^T tile
                pl.BlockSpec((TM, TN), lambda i, j, k: (i, j)),   # gate tile
                pl.BlockSpec((TM, TN), lambda i, j, k: (i, j)),   # combined bias
            ],
            out_specs=pl.BlockSpec((TM, TN), lambda i, j, k: (i, j)),
            scratch_shapes=[pltpu.VMEM((TM, TN), jnp.float32)],
        ),
        compiler_params=pltpu.CompilerParams(
            dimension_semantics=("parallel", "parallel", "arbitrary"),
            vmem_limit_bytes=48 * 1024 * 1024,
        ),
    )(x_p, w_p, gate_p, comb_p)

    out = out_p[:M, :Dout].reshape(B, S, Dout)
    if squeeze_seq:
        out = out[:, 0, :]
    return out


def init_params(key, dim_in, dim_out, dim_c):
    """Deterministic init matching nn.Linear shapes (uniform +/- 1/sqrt(fan_in))."""
    k1, k2, k3, k4, k5 = jax.random.split(key, 5)
    lim_main = 1.0 / jnp.sqrt(dim_in)
    lim_hyp = 1.0 / jnp.sqrt(1 + dim_c)
    return {
        "w":  jax.random.uniform(k1, (dim_out, dim_in), jnp.float32,
                                 -lim_main, lim_main),
        "b":  jax.random.uniform(k2, (dim_out,), jnp.float32,
                                 -lim_main, lim_main),
        "wg": jax.random.uniform(k3, (dim_out, 1 + dim_c), jnp.float32,
                                 -lim_hyp, lim_hyp),
        "bg": jax.random.uniform(k4, (dim_out,), jnp.float32,
                                 -lim_hyp, lim_hyp),
        "wb": jax.random.uniform(k5, (dim_out, 1 + dim_c), jnp.float32,
                                 -lim_hyp, lim_hyp),
    }


def reference(context, x, p):
    gate = context @ p["wg"].T + p["bg"]          # (B, Dout)
    bias = context @ p["wb"].T                    # (B, Dout)
    y = x @ p["w"].T + p["b"]                     # (B, S, Dout)
    return y * gate[:, None, :] + bias[:, None, :]


if __name__ == "__main__":
    B, S, dim_in, dim_out, dim_c = 2, 8, 32, 32, 7

    key = jax.random.PRNGKey(0)
    kp, kc, kx = jax.random.split(key, 3)
    params = init_params(kp, dim_in, dim_out, dim_c)
    context = jax.random.normal(kc, (B, 1 + dim_c), jnp.float32)
    x = jax.random.normal(kx, (B, S, dim_in), jnp.float32)

    fwd = jax.jit(concat_scale_linear)
    out = jax.block_until_ready(fwd(context, x, params))

    ref = reference(context, x, params)
    assert out.shape == (B, S, dim_out)
    assert jnp.allclose(out, ref, atol=1e-5, rtol=1e-5), "mismatch vs reference"

    print("KERNEL_OK")
</pallas_src>

<mosaic_0001>
module attributes {stable_mosaic.version = 11 : i64} {
  func.func @_modulated_matmul_kernel(%arg0: i32, %arg1: i32, %arg2: i32, %arg3: memref<16x128xf32, #tpu.memory_space<vmem>>, %arg4: memref<128x128xf32, #tpu.memory_space<vmem>>, %arg5: memref<16x128xf32, #tpu.memory_space<vmem>>, %arg6: memref<16x128xf32, #tpu.memory_space<vmem>>, %arg7: memref<16x128xf32, #tpu.memory_space<vmem>>, %arg8: memref<16x128xf32, #tpu.memory_space<vmem>>) attributes {dimension_semantics = [#tpu.dimension_semantics<parallel>, #tpu.dimension_semantics<parallel>, #tpu.dimension_semantics<arbitrary>], iteration_bounds = array<i64: 1, 1, 1>, scalar_prefetch = 0 : i64, scratch_operands = 1 : i64, tpu.core_type = #tpu.core_type<tc>, window_params = [{transform_indices = @transform_0, window_bounds = array<i64: 16, 128>}, {transform_indices = @transform_1, window_bounds = array<i64: 128, 128>}, {transform_indices = @transform_2, window_bounds = array<i64: 16, 128>}, {transform_indices = @transform_3, window_bounds = array<i64: 16, 128>}, {transform_indices = @transform_4, window_bounds = array<i64: 16, 128>}]} {
    %c0_i32 = arith.constant 0 : i32
    %0 = arith.cmpi eq, %arg2, %c0_i32 : i32
    %1 = arith.extui %0 : i1 to i32
    %c0_i32_0 = arith.constant 0 : i32
    %2 = arith.cmpi ne, %1, %c0_i32_0 : i32
    scf.if %2 {
      %cst_10 = arith.constant 0.000000e+00 : f32
      %12 = vector.broadcast %cst_10 : f32 to vector<16x128xf32>
      %c0_11 = arith.constant 0 : index
      %c0_12 = arith.constant 0 : index
      %13 = vector.load %arg8[%c0_11, %c0_12] : memref<16x128xf32, #tpu.memory_space<vmem>>, vector<16x128xf32>
      tpu.vector_store %arg8[%c0_11, %c0_12], %12 {strides = array<i32>} : memref<16x128xf32, #tpu.memory_space<vmem>>, vector<16x128xf32>,
    } else {
    }
    %c0 = arith.constant 0 : index
    %c0_1 = arith.constant 0 : index
    %3 = vector.load %arg8[%c0, %c0_1] : memref<16x128xf32, #tpu.memory_space<vmem>>, vector<16x128xf32>
    %c0_2 = arith.constant 0 : index
    %c0_3 = arith.constant 0 : index
    %4 = vector.load %arg3[%c0_2, %c0_3] : memref<16x128xf32, #tpu.memory_space<vmem>>, vector<16x128xf32>
    %c0_4 = arith.constant 0 : index
    %c0_5 = arith.constant 0 : index
    %5 = vector.load %arg4[%c0_4, %c0_5] : memref<128x128xf32, #tpu.memory_space<vmem>>, vector<128x128xf32>
    %cst = arith.constant dense<0.000000e+00> : vector<16x128xf32>
    %6 = tpu.matmul %4, %5, %cst {dimension_numbers = #tpu.dot_dimension_numbers<[1], [0], [0], [1], [0, 0, 1, 1], [], []>} : vector<16x128xf32>, vector<128x128xf32>, vector<16x128xf32> -> vector<16x128xf32>
    %7 = arith.addf %3, %6 : vector<16x128xf32>
    %c0_6 = arith.constant 0 : index
    %c0_7 = arith.constant 0 : index
    %8 = vector.load %arg8[%c0_6, %c0_7] : memref<16x128xf32, #tpu.memory_space<vmem>>, vector<16x128xf32>
    tpu.vector_store %arg8[%c0_6, %c0_7], %7 {strides = array<i32>} : memref<16x128xf32, #tpu.memory_space<vmem>>, vector<16x128xf32>,
    %c0_i32_8 = arith.constant 0 : i32
    %9 = arith.cmpi eq, %arg2, %c0_i32_8 : i32
    %10 = arith.extui %9 : i1 to i32
    %c0_i32_9 = arith.constant 0 : i32
    %11 = arith.cmpi ne, %10, %c0_i32_9 : i32
    scf.if %11 {
      %c0_10 = arith.constant 0 : index
      %c0_11 = arith.constant 0 : index
      %12 = vector.load %arg8[%c0_10, %c0_11] : memref<16x128xf32, #tpu.memory_space<vmem>>, vector<16x128xf32>
      %c0_12 = arith.constant 0 : index
      %c0_13 = arith.constant 0 : index
      %13 = vector.load %arg5[%c0_12, %c0_13] : memref<16x128xf32, #tpu.memory_space<vmem>>, vector<16x128xf32>
      %14 = arith.mulf %12, %13 : vector<16x128xf32>
      %c0_14 = arith.constant 0 : index
      %c0_15 = arith.constant 0 : index
      %15 = vector.load %arg6[%c0_14, %c0_15] : memref<16x128xf32, #tpu.memory_space<vmem>>, vector<16x128xf32>
      %16 = arith.addf %14, %15 : vector<16x128xf32>
      %c0_16 = arith.constant 0 : index
      %c0_17 = arith.constant 0 : index
      %17 = vector.load %arg7[%c0_16, %c0_17] : memref<16x128xf32, #tpu.memory_space<vmem>>, vector<16x128xf32>
      tpu.vector_store %arg7[%c0_16, %c0_17], %16 {strides = array<i32>} : memref<16x128xf32, #tpu.memory_space<vmem>>, vector<16x128xf32>,
    } else {
    }
    return
  }
  func.func @transform_0(%arg0: i32, %arg1: i32, %arg2: i32) -> (i32, i32) {
    %c0_i32 = arith.constant 0 : i32
    return %arg0, %arg2 : i32, i32
  }
  func.func @transform_1(%arg0: i32, %arg1: i32, %arg2: i32) -> (i32, i32) {
    %c0_i32 = arith.constant 0 : i32
    return %arg2, %arg1 : i32, i32
  }
  func.func @transform_2(%arg0: i32, %arg1: i32, %arg2: i32) -> (i32, i32) {
    %c0_i32 = arith.constant 0 : i32
    return %arg0, %arg1 : i32, i32
  }
  func.func @transform_3(%arg0: i32, %arg1: i32, %arg2: i32) -> (i32, i32) {
    %c0_i32 = arith.constant 0 : i32
    return %arg0, %arg1 : i32, i32
  }
  func.func @transform_4(%arg0: i32, %arg1: i32, %arg2: i32) -> (i32, i32) {
    %c0_i32 = arith.constant 0 : i32
    return %arg0, %arg1 : i32, i32
  }
}

</mosaic_0001>

<bundles_post_ra>
// kernel: concat_scale_linear.1
= control target key start
LH: loop header
LB: loop body
LE: loop exit
PB: predicated region body
PF: predicated region fallthrough
CT: control target
= control target key end

     0   :  { %s202_s1 = inlined_call_operand.vmem [shape: f32[128,128], index: 1, kind: input, shape index: {}]   ;;  %s203_s0 = inlined_call_operand.vmem [shape: f32[16,128], index: 0, kind: input, shape index: {}]   ;;  %s204_s2 = inlined_call_operand.vmem [shape: f32[16,128], index: 2, kind: input, shape index: {}]   ;;  %s205_s3 = inlined_call_operand.vmem [shape: f32[16,128], index: 3, kind: input, shape index: {}]   ;;  %s206_s4 = inlined_call_operand.vmem [shape: f32[16,128], index: 4, kind: output, shape index: {}]  }
   0x1   :  { %v42_v0 = vld [vmem:[%s202_s1 + $0x78] sm:$0xff]  ;;  %v41_v1 = vld [vmem:[%s202_s1 + $0x70] sm:$0xff]  ;;  %v40_v2 = vld [vmem:[%s202_s1 + $0x68] sm:$0xff] }
   0x2   :  { %43 = vmatpush.msra.mxu0 %v42_v0  ;;  %89 = vmatpush.msra.mxu1 %v42_v0  ;;  %v39_v3 = vld [vmem:[%s202_s1 + $0x60] sm:$0xff]  ;;  %v38_v4 = vld [vmem:[%s202_s1 + $0x58] sm:$0xff]  ;;  %v37_v5 = vld [vmem:[%s202_s1 + $0x50] sm:$0xff] }
   0x3   :  { %v36_v6 = vld [vmem:[%s202_s1 + $0x48] sm:$0xff]  ;;  %v35_v7 = vld [vmem:[%s202_s1 + $0x40] sm:$0xff]  ;;  %v34_v8 = vld [vmem:[%s202_s1 + $0x38] sm:$0xff] }
   0x4   :  { %44 = vmatpush.msra.mxu0 %v41_v1  ;;  %90 = vmatpush.msra.mxu1 %v41_v1  ;;  %v33_v9 = vld [vmem:[%s202_s1 + $0x30] sm:$0xff]  ;;  %v32_v10 = vld [vmem:[%s202_s1 + $0x28] sm:$0xff]  ;;  %v31_v11 = vld [vmem:[%s202_s1 + $0x20] sm:$0xff] }
   0x5   :  { %v30_v12 = vld [vmem:[%s202_s1 + $0x18] sm:$0xff]  ;;  %v29_v13 = vld [vmem:[%s202_s1 + $0x10] sm:$0xff]  ;;  %v28_v14 = vld [vmem:[%s202_s1 + $0x8] sm:$0xff] }
   0x6   :  { %45 = vmatpush.msra.mxu0 %v40_v2  ;;  %91 = vmatpush.msra.mxu1 %v40_v2  ;;  %v27_v15 = vld [vmem:[%s202_s1] sm:$0xff]  ;;  %v26_v17 = vld [vmem:[%s203_s0 + $0x8] sm:$0xff] }
   0x7   :  { %v25_v16 = vld [vmem:[%s203_s0] sm:$0xff]  ;;  %v76_v19 = vld [vmem:[%s204_s2 + $0x8] sm:$0xff] }
   0x8   :  { %46 = vmatpush.msra.mxu0 %v39_v3  ;;  %92 = vmatpush.msra.mxu1 %v39_v3  ;;  %v75_v18 = vld [vmem:[%s204_s2] sm:$0xff]  ;;  %v80_v23 = vld [vmem:[%s205_s3 + $0x8] sm:$0xff] }
   0x9   :  { %v79_v21 = vld [vmem:[%s205_s3] sm:$0xff] }
   0xa   :  { %47 = vmatpush.msra.mxu0 %v38_v4  ;;  %93 = vmatpush.msra.mxu1 %v38_v4 }
   0xc   :  { %48 = vmatpush.msra.mxu0 %v37_v5  ;;  %94 = vmatpush.msra.mxu1 %v37_v5 }
   0xe   :  { %49 = vmatpush.msra.mxu0 %v36_v6  ;;  %95 = vmatpush.msra.mxu1 %v36_v6 }
  0x10   :  { %50 = vmatpush.msra.mxu0 %v35_v7  ;;  %96 = vmatpush.msra.mxu1 %v35_v7 }
  0x12   :  { %51 = vmatpush.msra.mxu0 %v34_v8  ;;  %97 = vmatpush.msra.mxu1 %v34_v8 }
  0x14   :  { %52 = vmatpush.msra.mxu0 %v33_v9  ;;  %98 = vmatpush.msra.mxu1 %v33_v9 }
  0x16   :  { %53 = vmatpush.msra.mxu0 %v32_v10  ;;  %99 = vmatpush.msra.mxu1 %v32_v10 }
  0x18   :  { %54 = vmatpush.msra.mxu0 %v31_v11  ;;  %100 = vmatpush.msra.mxu1 %v31_v11 }
  0x1a   :  { %55 = vmatpush.msra.mxu0 %v30_v12  ;;  %101 = vmatpush.msra.mxu1 %v30_v12 }
  0x1c   :  { %56 = vmatpush.msra.mxu0 %v29_v13  ;;  %102 = vmatpush.msra.mxu1 %v29_v13 }
  0x1e   :  { %57 = vmatpush.msra.mxu0 %v28_v14  ;;  %103 = vmatpush.msra.mxu1 %v28_v14 }
  0x20   :  { %58 = vmatpush.msra.mxu0 %v27_v15  ;;  %104 = vmatpush.msra.mxu1 %v27_v15 }
  0x21   :  { %59 = vmatmul.f32.vlgmr.msra.gmra.mxu0 %v25_v16  ;;  %62 = vmatmul.f32.vlgmr.msra.gmra.mxu1 %v26_v17 }
  0x9e   :  { %v60_v20 = vpop.f32.mrf.mxu0  ;;  %v63_v22 = vpop.f32.mrf.mxu1 }
  0x9f   :  { %v77_v24 = vmul.f32 %v75_v18, %v60_v20  ;;  %v78_v25 = vmul.f32 %v76_v19, %v63_v22 }
  0xa1   :  { %v81_v26 = vadd.f32 %v79_v21, %v77_v24  ;;  %v82_v27 = vadd.f32 %v80_v23, %v78_v25 }
  0xa3   :  { %83 = vst [vmem:[%s206_s4] sm:$0xff] %v81_v26 }
  0xa4   :  { %84 = vst [vmem:[%s206_s4 + $0x8] sm:$0xff] %v82_v27 }

</bundles_post_ra>
